<compile_context>
chip_gen: v5e
topology: v5e:2x2
jax: 0.10.0
libtpu: 0.0.40
codegen_flags: <defaults>
</compile_context>

<pallas_src>
import jax
import jax.numpy as jnp
from jax.experimental import pallas as pl
from jax.experimental.pallas import tpu as pltpu


def _transpose_scale_kernel(x_ref, s_ref, o_ref):
    # x_ref: (HW, Cblk)  spatially-flattened NHWC tile, channels on the lanes
    # s_ref: (Cblk, 1)   per-channel scale, already in the output (row) layout
    # o_ref: (Cblk, HW)  NCHW row-major slab for this channel block
    #
    # Transpose straight out of the input buffer (XLU), fold the multiply into
    # the post-transpose vregs (VPU): no (HW, Cblk) scaled temp to spill.
    o_ref[...] = x_ref[...].T * s_ref[...]


def _pick_channel_block(C: int) -> int:
    # Prefer >=384-channel blocks so the ~0.35 us/step grid overhead does not
    # eat the pipelining win; blocks must be multiples of 128 (lane width).
    for cb in (512, 384, 256, 128):
        if C % cb == 0:
            return cb
    return C  # fall back to a single full-array block


@jax.jit
def layer_scale_permute_mul(x_nhwc: jax.Array, scale: jax.Array) -> jax.Array:
    """x_nhwc: (1, H, W, C);  scale: (C, 1, 1).

    Returns (1, C, H, W), matching
        torch.permute(x, [0, 3, 1, 2]) * layer_scale
    """
    N, H, W, C = x_nhwc.shape
    assert N == 1, "kernel specialized for the module's batch size of 1"
    HW = H * W
    itemsize = jnp.dtype(x_nhwc.dtype).itemsize

    # Layout-preserving reshapes inside the same jit fusion.
    x2d = x_nhwc.reshape(HW, C)          # channels stay on the packed lane axis
    s_col = scale.reshape(C, 1)          # column layout == output row layout

    CB = _pick_channel_block(C)
    grid = (C // CB,)

    out2d = pl.pallas_call(
        _transpose_scale_kernel,
        out_shape=jax.ShapeDtypeStruct((C, HW), x_nhwc.dtype),
        grid=grid,
        in_specs=[
            pl.BlockSpec((HW, CB), lambda c: (0, c)),   # (49, 512) tile
            pl.BlockSpec((CB, 1), lambda c: (c, 0)),    # (512, 1) scale column
        ],
        out_specs=pl.BlockSpec((CB, HW), lambda c: (c, 0)),  # (512, 49) slab
        compiler_params=pltpu.CompilerParams(
            # Reduction-free but deliberately NOT megacore-parallel: the whole
            # op is launch/DMA bound, cross-TC sync would cost more than it saves.
            dimension_semantics=("arbitrary",),
        ),
        cost_estimate=pl.CostEstimate(
            flops=HW * C,
            transcendentals=0,
            bytes_accessed=2 * HW * C * itemsize + C * itemsize,
        ),
    )(x2d, s_col)

    # (C, HW) -> (1, C, H, W): the module's required NCHW result.
    return out2d.reshape(N, C, H, W)


if __name__ == "__main__":
    key = jax.random.PRNGKey(0)
    k_x, k_s = jax.random.split(key)

    # Shapes implied by the module's forward / __init__.
    N, H, W, C = 1, 7, 7, 1536
    x394 = jax.random.normal(k_x, (N, H, W, C), dtype=jnp.float32)          # torch.randn([1,7,7,1536])
    layer_scale33 = jax.random.uniform(k_s, (C, 1, 1), dtype=jnp.float32)   # torch.rand([1536,1,1])

    out = layer_scale_permute_mul(x394, layer_scale33)
    out = jax.block_until_ready(out)

    # Reference of the PyTorch semantics: permute to NCHW, broadcast-multiply.
    ref = jnp.transpose(x394, (0, 3, 1, 2)) * layer_scale33.reshape(1, C, 1, 1)
    assert out.shape == (N, C, H, W), out.shape
    assert jnp.allclose(out, ref, atol=1e-6, rtol=1e-6)

    print("KERNEL_OK")
</pallas_src>

<mosaic_0001>
module attributes {stable_mosaic.version = 11 : i64} {
  func.func @_transpose_scale_kernel(%arg0: i32, %arg1: memref<49x512xf32, #tpu.memory_space<vmem>>, %arg2: memref<512x1xf32, #tpu.memory_space<vmem>>, %arg3: memref<512x49xf32, #tpu.memory_space<vmem>>) attributes {dimension_semantics = [#tpu.dimension_semantics<arbitrary>], iteration_bounds = array<i64: 3>, scalar_prefetch = 0 : i64, scratch_operands = 0 : i64, tpu.core_type = #tpu.core_type<tc>, window_params = [{transform_indices = @transform_0, window_bounds = array<i64: 49, 512>}, {transform_indices = @transform_1, window_bounds = array<i64: 512, 1>}, {transform_indices = @transform_2, window_bounds = array<i64: 512, 49>}]} {
    %c0 = arith.constant 0 : index
    %c0_0 = arith.constant 0 : index
    %0 = vector.load %arg1[%c0, %c0_0] : memref<49x512xf32, #tpu.memory_space<vmem>>, vector<49x512xf32>
    %1 = tpu.transpose %0, [1, 0] : vector<49x512xf32> -> vector<512x49xf32>
    %c0_1 = arith.constant 0 : index
    %c0_2 = arith.constant 0 : index
    %2 = vector.load %arg2[%c0_1, %c0_2] : memref<512x1xf32, #tpu.memory_space<vmem>>, vector<512x1xf32>
    %3 = vector.broadcast %2 : vector<512x1xf32> to vector<512x49xf32>
    %4 = arith.mulf %1, %3 : vector<512x49xf32>
    %c0_3 = arith.constant 0 : index
    %c0_4 = arith.constant 0 : index
    %5 = vector.load %arg3[%c0_3, %c0_4] : memref<512x49xf32, #tpu.memory_space<vmem>>, vector<512x49xf32>
    tpu.vector_store %arg3[%c0_3, %c0_4], %4 {strides = array<i32>} : memref<512x49xf32, #tpu.memory_space<vmem>>, vector<512x49xf32>,
    return
  }
  func.func @transform_0(%arg0: i32) -> (i32, i32) {
    %c0_i32 = arith.constant 0 : i32
    %c0_i32_0 = arith.constant 0 : i32
    return %c0_i32, %arg0 : i32, i32
  }
  func.func @transform_1(%arg0: i32) -> (i32, i32) {
    %c0_i32 = arith.constant 0 : i32
    %c0_i32_0 = arith.constant 0 : i32
    return %arg0, %c0_i32 : i32, i32
  }
  func.func @transform_2(%arg0: i32) -> (i32, i32) {
    %c0_i32 = arith.constant 0 : i32
    %c0_i32_0 = arith.constant 0 : i32
    return %arg0, %c0_i32 : i32, i32
  }
}

</mosaic_0001>

<bundles_post_ra>
// kernel: layer_scale_permute_mul.1
= control target key start
LH: loop header
LB: loop body
LE: loop exit
PB: predicated region body
PF: predicated region fallthrough
CT: control target
= control target key end

     0   :  { %s1070_s9 = smov 0   ;;  %s1072_s10 = smov 0   ;;  %s1613_s0 = inlined_call_operand.vmem [shape: f32[49,1536], index: 0, kind: input, shape index: {}]   ;;  %s1614_s1 = inlined_call_operand.vmem [shape: f32[1536,1], index: 1, kind: input, shape index: {}]   ;;  %s1615_s2 = inlined_call_operand.vmem [shape: f32[1536,49], index: 2, kind: output, shape index: {}]  }
   0x1   :  { %s1074_s11 = smov 0  }
   0x2 LB: > { %s985_s12 = sadd.s32 4294967295, %s1052_s11   ;;  %s1087_s13 = sadd.s32 1, %s1052_s11   ;;  %s1052_s11 = sphi %s1074_s11, %s1618_s11   ;;  %s1048_s10 = sphi %s1072_s10, %s1617_s10   ;;  %s1044_s9 = sphi %s1070_s9, %s1616_s9  }
   0x3   : > { %s16_s14 = ssub.s32 %s1052_s11, %s1087_s13  ;;  %s19_s15 = sadd.s32 1, %s1048_s10 }
   0x4   : > { %p17_p0 = scmp.eq.s32.totalorder %s16_s14, 0  ;;  %p26_p1 = scmp.ne.s32.totalorder %s1048_s10, %s1044_s9 }
   0x5   : > { %p27_p2 = scmp.eq.s32.totalorder %s1052_s11, 0  ;;  %p988_p4 = scmp.ge.s32.totalorder %s1052_s11, 3 }
   0x6   : > { %s1096_s16 = scalar_select %p17_p0, %s1048_s10, %s19_s15  }
   0x7   : > { %p28_p3 = por %p27_p2, %p26_p1  ;;  %104 = sbr.rel (%p988_p4) target bundleno = 44 (0x2c), region = 16 }
   0xc   : > { %107 = sbr.rel (!%p28_p3) target bundleno = 44 (0x2c), region = 20  ;;  %s109_s17 = sand.u32 (%p28_p3), 1, %s1048_s10  }
   0xd   : > { %s998_s18 = sshll.u32 (%p28_p3), %s1052_s11, 5  ;;  %s999_s19 = smul.u32 (%p28_p3), 224, %s109_s17 }
   0xe   : > { %s1104_s22 = scalar_lea.vmem (%p28_p3), %s1613_s0, %s998_s18 }
   0xf   : > { %v127_v0 = vld [vmem:[%s1104_s22] sm:$0xff] (%p28_p3)  ;;  %v129_v1 = vld [vmem:[%s1104_s22 + $0x8] sm:$0xff] (%p28_p3)  ;;  %v131_v2 = vld [vmem:[%s1104_s22 + $0x10] sm:$0xff] (%p28_p3)  ;;  %s1109_s23 = scalar_lea.vmem (%p28_p3), [#allocation2], %s999_s19 }
  0x10   : > { %128 = vst [vmem:[%s1109_s23] sm:$0xff] (%p28_p3), %v127_v0  ;;  %v133_v3 = vld [vmem:[%s1104_s22 + $0x18] sm:$0xff] (%p28_p3)  ;;  %v135_v4 = vld [vmem:[%s1104_s22 + $0x60] sm:$0xff] (%p28_p3)  ;;  %v137_v5 = vld [vmem:[%s1104_s22 + $0x68] sm:$0xff] (%p28_p3) }
  0x11   : > { %130 = vst [vmem:[%s1109_s23 + $0x8] sm:$0xff] %v129_v1  ;;  %v139_v6 = vld [vmem:[%s1104_s22 + $0x70] sm:$0xff]  ;;  %v141_v7 = vld [vmem:[%s1104_s22 + $0x78] sm:$0xff]  ;;  %v143_v8 = vld [vmem:[%s1104_s22 + $0xc0] sm:$0xff] }
  0x12   : > { %132 = vst [vmem:[%s1109_s23 + $0x10] sm:$0xff] %v131_v2  ;;  %v145_v9 = vld [vmem:[%s1104_s22 + $0xc8] sm:$0xff]  ;;  %v147_v10 = vld [vmem:[%s1104_s22 + $0xd0] sm:$0xff]  ;;  %v149_v11 = vld [vmem:[%s1104_s22 + $0xd8] sm:$0xff] }
  0x13   : > { %134 = vst [vmem:[%s1109_s23 + $0x18] sm:$0xff] %v133_v3  ;;  %v151_v12 = vld [vmem:[%s1104_s22 + $0x120] sm:$0xff]  ;;  %v153_v13 = vld [vmem:[%s1104_s22 + $0x128] sm:$0xff]  ;;  %v155_v14 = vld [vmem:[%s1104_s22 + $0x130] sm:$0xff] }
  0x14   : > { %136 = vst [vmem:[%s1109_s23 + $0x20] sm:$0xff] %v135_v4  ;;  %v157_v15 = vld [vmem:[%s1104_s22 + $0x138] sm:$0xff]  ;;  %v159_v16 = vld [vmem:[%s1104_s22 + $0x180] sm:$0xff]  ;;  %v161_v17 = vld [vmem:[%s1104_s22 + $0x188] sm:$0xff] }
  0x15   : > { %138 = vst [vmem:[%s1109_s23 + $0x28] sm:$0xff] %v137_v5  ;;  %v163_v18 = vld [vmem:[%s1104_s22 + $0x190] sm:$0xff]  ;;  %v165_v19 = vld [vmem:[%s1104_s22 + $0x198] sm:$0xff]  ;;  %v167_v20 = vld [vmem:[%s1104_s22 + $0x1e0] sm:$0xff] }
  0x16   : > { %140 = vst [vmem:[%s1109_s23 + $0x30] sm:$0xff] %v139_v6  ;;  %v169_v21 = vld [vmem:[%s1104_s22 + $0x1e8] sm:$0xff]  ;;  %v171_v22 = vld [vmem:[%s1104_s22 + $0x1f0] sm:$0xff]  ;;  %v173_v23 = vld [vmem:[%s1104_s22 + $0x1f8] sm:$0xff] }
  0x17   : > { %142 = vst [vmem:[%s1109_s23 + $0x38] sm:$0xff] %v141_v7  ;;  %v175_v24 = vld [vmem:[%s1104_s22 + $0x240] sm:$0xff]  ;;  %v177_v25 = vld [vmem:[%s1104_s22 + $0x248] sm:$0xff]  ;;  %v179_v26 = vld [vmem:[%s1104_s22 + $0x250] sm:$0xff] }
  0x18   : > { %144 = vst [vmem:[%s1109_s23 + $0x40] sm:$0xff] %v143_v8  ;;  %v181_v27 = vld [vmem:[%s1104_s22 + $0x258] sm:$0xff] }
  0x19   : > { %146 = vst [vmem:[%s1109_s23 + $0x48] sm:$0xff] %v145_v9 }
  0x1a   : > { %148 = vst [vmem:[%s1109_s23 + $0x50] sm:$0xff] %v147_v10 }
  0x1b   : > { %150 = vst [vmem:[%s1109_s23 + $0x58] sm:$0xff] %v149_v11 }
  0x1c   : > { %152 = vst [vmem:[%s1109_s23 + $0x60] sm:$0xff] %v151_v12 }
  0x1d   : > { %154 = vst [vmem:[%s1109_s23 + $0x68] sm:$0xff] %v153_v13 }
  0x1e   : > { %156 = vst [vmem:[%s1109_s23 + $0x70] sm:$0xff] %v155_v14 }
  0x1f   : > { %158 = vst [vmem:[%s1109_s23 + $0x78] sm:$0xff] %v157_v15 }
  0x20   : > { %160 = vst [vmem:[%s1109_s23 + $0x80] sm:$0xff] %v159_v16 }
  0x21   : > { %162 = vst [vmem:[%s1109_s23 + $0x88] sm:$0xff] %v161_v17 }
  0x22   : > { %164 = vst [vmem:[%s1109_s23 + $0x90] sm:$0xff] %v163_v18 }
  0x23   : > { %166 = vst [vmem:[%s1109_s23 + $0x98] sm:$0xff] %v165_v19 }
  0x24   : > { %168 = vst [vmem:[%s1109_s23 + $0xa0] sm:$0xff] %v167_v20 }
  0x25   : > { %170 = vst [vmem:[%s1109_s23 + $0xa8] sm:$0xff] %v169_v21 }
  0x26   : > { %172 = vst [vmem:[%s1109_s23 + $0xb0] sm:$0xff] %v171_v22 }
  0x27   : > { %174 = vst [vmem:[%s1109_s23 + $0xb8] sm:$0xff] %v173_v23 }
  0x28   : > { %176 = vst [vmem:[%s1109_s23 + $0xc0] sm:$0xff] %v175_v24 }
  0x29   : > { %178 = vst [vmem:[%s1109_s23 + $0xc8] sm:$0xff] %v177_v25 }
  0x2a   : > { %180 = vst [vmem:[%s1109_s23 + $0xd0] sm:$0xff] %v179_v26 }
  0x2b   : > { %182 = vst [vmem:[%s1109_s23 + $0xd8] sm:$0xff] %v181_v27 }
  0x2c PF: > { %p991_p5 = scmp.ge.s32.totalorder %s1052_s11, 1  ;;  %p196_p6 = scmp.lt.s32.totalorder %s1052_s11, 4 }
  0x2e   : > { %p197_p7 = pnand %p991_p5, %p196_p6 }
  0x2f   : > { %s203_s24 = sand.u32 (!%p197_p7), 1, %s1044_s9   ;;  %s992_s27 = sshll.u32 (!%p197_p7), %s985_s12, 6 }
  0x30   : > { %200 = sbr.rel (%p197_p7) target bundleno = 603 (0x25b), region = 47  ;;  %p231_p8 = scmp.lt.s32.totalorder (!%p197_p7), %s992_s27, 191 }
  0x31   : > { %s1000_s25 = smul.u32 (!%p197_p7), 224, %s203_s24 }
  0x33   : > { %s1167_s26 = scalar_lea.vmem (!%p197_p7), [#allocation2], %s1000_s25 }
  0x35   : > { %v244_v28 = vld [vmem:[%s1167_s26 + $0x10] sm:$0xff]  ;;  %v243_v29 = vld [vmem:[%s1167_s26 + $0x8] sm:$0xff]  ;;  %v242_v30 = vld [vmem:[%s1167_s26] sm:$0xff]  ;;  %v1054_v52 = vmov 0   ;;  %s1620_s27 = smov (!%p231_p8, %s992_s27), 191  ;;  %vm846_vm0 = vcmask 400384  }
  0x36   : > { %334 = vxpose.xlu2.b32.start [1/7] (short) %v244_v28, 128  ;;  %302 = vxpose.xlu1.b32.start [1/7] (short) %v243_v29, 128  ;;  %v248_v31 = vld [vmem:[%s1167_s26 + $0x30] sm:$0xff]  ;;  %v247_v32 = vld [vmem:[%s1167_s26 + $0x28] sm:$0xff]  ;;  %v246_v33 = vld [vmem:[%s1167_s26 + $0x20] sm:$0xff]  ;;  %s993_s28 = sshll.u32 %s1620_s27, 3 }
  0x37   : > { %270 = vxpose.xlu0.b32.start [1/7] (short) %v242_v30, 128  ;;  %v252_v34 = vld [vmem:[%s1167_s26 + $0x50] sm:$0xff]  ;;  %v251_v35 = vld [vmem:[%s1167_s26 + $0x48] sm:$0xff]  ;;  %v250_v36 = vld [vmem:[%s1167_s26 + $0x40] sm:$0xff]  ;;  %s1235_s3 = scalar_lea.vmem %s1614_s1, %s993_s28  ;;  %s1341_s6 = scalar_lea.vmem %s1615_s2, %s993_s28 }
  0x38   : > { %v256_v37 = vld [vmem:[%s1167_s26 + $0x70] sm:$0xff]  ;;  %v255_v38 = vld [vmem:[%s1167_s26 + $0x68] sm:$0xff]  ;;  %v254_v39 = vld [vmem:[%s1167_s26 + $0x60] sm:$0xff] }
  0x39   : > { %v260_v40 = vld [vmem:[%s1167_s26 + $0x90] sm:$0xff]  ;;  %v259_v41 = vld [vmem:[%s1167_s26 + $0x88] sm:$0xff]  ;;  %v258_v42 = vld [vmem:[%s1167_s26 + $0x80] sm:$0xff] }
  0x3a   : > { %v264_v43 = vld [vmem:[%s1167_s26 + $0xb0] sm:$0xff]  ;;  %v263_v44 = vld [vmem:[%s1167_s26 + $0xa8] sm:$0xff]  ;;  %v262_v45 = vld [vmem:[%s1167_s26 + $0xa0] sm:$0xff] }
  0x3b   : > { %v268_v46 = vld [vmem:[%s1167_s26 + $0xd0] sm:$0x1]  ;;  %v267_v47 = vld [vmem:[%s1167_s26 + $0xc8] sm:$0x1]  ;;  %v266_v48 = vld [vmem:[%s1167_s26 + $0xc0] sm:$0x1] }
  0x3c   : > { %v245_v49 = vld [vmem:[%s1167_s26 + $0x18] sm:$0xff]  ;;  %v398_v8 = vld [vmem:[%s1235_s3] sm:$0xff]  ;;  %v399_v14 = vld [vmem:[%s1235_s3 + $0x8] sm:$0xff] }
  0x3d   : > { %v249_v50 = vld [vmem:[%s1167_s26 + $0x38] sm:$0xff]  ;;  %v402_v15 = vld [vmem:[%s1235_s3 + $0x20] sm:$0xff]  ;;  %v403_v19 = vld [vmem:[%s1235_s3 + $0x28] sm:$0xff] }
  0x3e   : > { %335 = vxpose.xlu2.b32.cont [2/7] (short) %v248_v31, 128  ;;  %303 = vxpose.xlu1.b32.cont [2/7] (short) %v247_v32, 128  ;;  %v253_v51 = vld [vmem:[%s1167_s26 + $0x58] sm:$0xff]  ;;  %v404_v20 = vld [vmem:[%s1235_s3 + $0x30] sm:$0xff]  ;;  %v406_v25 = vld [vmem:[%s1235_s3 + $0x40] sm:$0xff] }
  0x3f   : > { %271 = vxpose.xlu0.b32.cont [2/7] (short) %v246_v33, 128  ;;  %v257_v53 = vld [vmem:[%s1167_s26 + $0x78] sm:$0xff]  ;;  %v407_v29 = vld [vmem:[%s1235_s3 + $0x48] sm:$0xff]  ;;  %v408_v30 = vld [vmem:[%s1235_s3 + $0x50] sm:$0xff] }
  0x40   : > { %v261_v55 = vld [vmem:[%s1167_s26 + $0x98] sm:$0xff] }
  0x41   : > { %v265_v58 = vld [vmem:[%s1167_s26 + $0xb8] sm:$0xff] }
  0x42   : > { %v269_v59 = vld [vmem:[%s1167_s26 + $0xd8] sm:$0x1] }
  0x43   : > { %v401_v11 = vld [vmem:[%s1235_s3 + $0x18] sm:$0xff] }
  0x44   : > { %v405_v24 = vld [vmem:[%s1235_s3 + $0x38] sm:$0xff] }
  0x45   : > { %v409_v32 = vld [vmem:[%s1235_s3 + $0x58] sm:$0xff] }
  0x46   : > { %336 = vxpose.xlu2.b32.cont [3/7] (short) %v252_v34, 128  ;;  %304 = vxpose.xlu1.b32.cont [3/7] (short) %v251_v35, 128  ;;  %v410_v34 = vld [vmem:[%s1235_s3 + $0x60] sm:$0xff] }
  0x47   : > { %272 = vxpose.xlu0.b32.cont [3/7] (short) %v250_v36, 128 }
  0x4e   : > { %337 = vxpose.xlu2.b32.cont [4/7] (short) %v256_v37, 128  ;;  %305 = vxpose.xlu1.b32.cont [4/7] (short) %v255_v38, 128  ;;  %v411_v37 = vld [vmem:[%s1235_s3 + $0x68] sm:$0xff]  ;;  %v412_v38 = vld [vmem:[%s1235_s3 + $0x70] sm:$0xff] }
  0x4f   : > { %273 = vxpose.xlu0.b32.cont [4/7] (short) %v254_v39, 128 }
  0x56   : > { %338 = vxpose.xlu2.b32.cont [5/7] (short) %v260_v40, 128  ;;  %306 = vxpose.xlu1.b32.cont [5/7] (short) %v259_v41, 128 }
  0x57   : > { %274 = vxpose.xlu0.b32.cont [5/7] (short) %v258_v42, 128  ;;  %v413_v42 = vld [vmem:[%s1235_s3 + $0x78] sm:$0xff] }
  0x5e   : > { %339 = vxpose.xlu2.b32.cont [6/7] (short) %v264_v43, 128  ;;  %307 = vxpose.xlu1.b32.cont [6/7] (short) %v263_v44, 128  ;;  %v414_v43 = vld [vmem:[%s1235_s3 + $0x80] sm:$0xff] }
  0x5f   : > { %275 = vxpose.xlu0.b32.cont [6/7] (short) %v262_v45, 128 }
  0x66   : > { %340 = vxpose.xlu2.b32.end [7/7] (short) %v268_v46, 128  ;;  %308 = vxpose.xlu1.b32.end [7/7] (short) %v267_v47, 128  ;;  %v415_v47 = vld [vmem:[%s1235_s3 + $0x88] sm:$0xff] }
  0x67   : > { %276 = vxpose.xlu0.b32.end [7/7] (short) %v266_v48, 128  ;;  %v416_v48 = vld [vmem:[%s1235_s3 + $0x90] sm:$0xff] }
  0xb7   : > { %366 = vxpose.xlu0.b32.start [1/7] (short) %v245_v49, 128 }
  0xb9   : > { %1027 = vset.pattern.permute.xlu1 %v1054_v52 }
  0xbf   : > { %367 = vxpose.xlu0.b32.cont [2/7] (short) %v249_v50, 128 }
  0xc7   : > { %368 = vxpose.xlu0.b32.cont [3/7] (short) %v253_v51, 128  ;;  %v417_v51 = vld [vmem:[%s1235_s3 + $0x98] sm:$0xff] }
  0xc8   : > { %1028 = vset.pattern.permute.xlu2 %v1054_v52 }
  0xcf   : > { %369 = vxpose.xlu0.b32.cont [4/7] (short) %v257_v53, 128  ;;  %v1196_v54 = vpop.trf.xlu2 }
  0xd7   : > { %370 = vxpose.xlu0.b32.cont [5/7] (short) %v261_v55, 128  ;;  %v1201_v57 = vpop.trf.xlu2  ;;  %v418_v55 = vld [vmem:[%s1235_s3 + $0xa0] sm:$0xff] }
  0xda   : > { %v1199_v56 = vpop.trf.xlu1 }
  0xdb   : > { %v1209_v62 = vpop.trf.xlu0 }
  0xdf   : > { %371 = vxpose.xlu0.b32.cont [6/7] (short) %v265_v58, 128  ;;  %v1207_v61 = vpop.trf.xlu2  ;;  %v419_v58 = vld [vmem:[%s1235_s3 + $0xa8] sm:$0xff] }
  0xe2   : > { %v1205_v60 = vpop.trf.xlu1 }
  0xe3   : > { %v1215_v1 = vpop.trf.xlu0 }
  0xe7   : > { %372 = vxpose.xlu0.b32.end [7/7] (short) %v269_v59, 128  ;;  %v1213_v0 = vpop.trf.xlu2 }
  0xea   : > { %v1211_v63 = vpop.trf.xlu1 }
  0xeb   : > { %v1221_v3 = vpop.trf.xlu0 }
  0xef   : > { %v1223_v4 = vpop.trf.xlu2 }
  0xf2   : > { %v1219_v2 = vpop.trf.xlu1 }
  0xf3   : > { %v1228_v5 = vpop.trf.xlu0 }
  0xf7   : > { %v1239_v7 = vpop.trf.xlu2 }
  0xfa   : > { %v1237_v6 = vpop.trf.xlu1 }
  0xfb   : > { %v1242_v9 = vpop.trf.xlu0 }
  0xff   : > { %v1247_v12 = vpop.trf.xlu2 }
 0x102   : > { %v1244_v10 = vpop.trf.xlu1 }
 0x103   : > { %v1249_v13 = vpop.trf.xlu0 }
 0x107   : > { %v1255_v17 = vpop.trf.xlu2 }
 0x108   : > { %464 = vperm.xlu1 %1027, %v398_v8  }
 0x10a   : > { %v1253_v16 = vpop.trf.xlu1 }
 0x10b   : > { %v1257_v18 = vpop.trf.xlu0 }
 0x10f   : > { %v1265_v23 = vpop.trf.xlu2 }
 0x110   : > { %479 = vperm.xlu1 %1027, %v401_v11  }
 0x112   : > { %v1261_v21 = vpop.trf.xlu1 }
 0x113   : > { %v1263_v22 = vpop.trf.xlu0 }
 0x117   : > { %469 = vperm.xlu2 %1028, %v399_v14   ;;  %v1273_v28 = vpop.trf.xlu2  ;;  %v421_v14 = vld [vmem:[%s1235_s3 + $0xb8] sm:$0xff] }
 0x118   : > { %484 = vperm.xlu1 %1027, %v402_v15   ;;  %v422_v15 = vld [vmem:[%s1235_s3 + $0xc0] sm:$0xff] }
 0x11a   : > { %v1271_v27 = vpop.trf.xlu1 }
 0x11b   : > { %v1269_v26 = vpop.trf.xlu0 }
 0x11f   : > { %489 = vperm.xlu2 %1028, %v403_v19   ;;  %v1283_v35 = vpop.trf.xlu2 }
 0x120   : > { %494 = vperm.xlu1 %1027, %v404_v20  }
 0x122   : > { %v1280_v33 = vpop.trf.xlu1 }
 0x123   : > { %v1277_v31 = vpop.trf.xlu0 }
 0x127   : > { %499 = vperm.xlu2 %1028, %v405_v24   ;;  %v1291_v40 = vpop.trf.xlu2 }
 0x128   : > { %504 = vperm.xlu1 %1027, %v406_v25   ;;  %v423_v25 = vld [vmem:[%s1235_s3 + $0xc8] sm:$0xff] }
 0x12a   : > { %v1289_v39 = vpop.trf.xlu1 }
 0x12b   : > { %v1285_v36 = vpop.trf.xlu0 }
 0x12f   : > { %509 = vperm.xlu2 %1028, %v407_v29   ;;  %v1299_v45 = vpop.trf.xlu2  ;;  %v424_v29 = vld [vmem:[%s1235_s3 + $0xd0] sm:$0xff] }
 0x130   : > { %514 = vperm.xlu1 %1027, %v408_v30  }
 0x132   : > { %v1297_v44 = vpop.trf.xlu1 }
 0x133   : > { %v1293_v41 = vpop.trf.xlu0 }
 0x137   : > { %519 = vperm.xlu2 %1028, %v409_v32   ;;  %v1308_v50 = vpop.trf.xlu2 }
 0x138   : > { %524 = vperm.xlu1 %1027, %v410_v34  }
 0x13a   : > { %v1306_v49 = vpop.trf.xlu1 }
 0x13b   : > { %v1301_v46 = vpop.trf.xlu0 }
 0x13f   : > { %529 = vperm.xlu2 %1028, %v411_v37   ;;  %v1318_v8 = vpop.trf.xlu2 }
 0x140   : > { %534 = vperm.xlu1 %1027, %v412_v38   ;;  %v425_v38 = vld [vmem:[%s1235_s3 + $0xd8] sm:$0xff] }
 0x142   : > { %v1315_v59 = vpop.trf.xlu1 }
 0x143   : > { %v1311_v53 = vpop.trf.xlu0 }
 0x147   : > { %539 = vperm.xlu2 %1028, %v413_v42   ;;  %v1328_v24 = vpop.trf.xlu2  ;;  %v426_v42 = vld [vmem:[%s1235_s3 + $0xe0] sm:$0xff] }
 0x148   : > { %544 = vperm.xlu1 %1027, %v414_v43  }
 0x14a   : > { %v1326_v20 = vpop.trf.xlu1 }
 0x14b   : > { %v1320_v11 = vpop.trf.xlu0 }
 0x14e   : > { %1029 = vset.pattern.permute.xlu0 %v1054_v52  ;;  %v420_v52 = vld [vmem:[%s1235_s3 + $0xb0] sm:$0xff] }
 0x14f   : > { %549 = vperm.xlu2 %1028, %v415_v47  }
 0x150   : > { %554 = vperm.xlu1 %1027, %v416_v48  }
 0x152   : > { %v1334_v32 = vpop.trf.xlu1 }
 0x153   : > { %v1324_v19 = vpop.trf.xlu0 }
 0x157   : > { %559 = vperm.xlu2 %1028, %v417_v51  }
 0x158   : > { %564 = vperm.xlu1 %1027, %v418_v55  }
 0x15b   : > { %v1332_v30 = vpop.trf.xlu0 }
 0x15f   : > { %569 = vperm.xlu2 %1028, %v419_v58   ;;  %v428_v58 = vld [vmem:[%s1235_s3 + $0xf0] sm:$0xff] }
 0x160   : > { %574 = vperm.xlu1 %1027, %v420_v52  }
 0x163   : > { %v1348_v47 = vpop.trf.xlu0 }
 0x167   : > { %579 = vperm.xlu2 %1028, %v421_v14  }
 0x168   : > { %584 = vperm.xlu1 %1027, %v422_v15  }
 0x16f   : > { %589 = vperm.xlu2 %1028, %v423_v25   ;;  %v1360_v25 = vpop.trf.xlu0 }
 0x170   : > { %594 = vperm.xlu1 %1027, %v424_v29   ;;  %v430_v29 = vld [vmem:[%s1235_s3 + $0x100] sm:$0xff] }
 0x171   : > { %v470_v34 = vpop.permute.xlu2 %469 }
 0x172   : > { %v783_v37 = vmul.f32 %v470_v34, %v1215_v1  ;;  %v427_v1 = vld [vmem:[%s1235_s3 + $0xe8] sm:$0xff] }
 0x174   : > { %848 = vst.msk [vmem:[%s1341_s6 + $0x8] sm:$0xff] %vm846_vm0, %v783_v37 }
 0x177   : > { %599 = vperm.xlu2 %1028, %v425_v38   ;;  %v431_v38 = vld [vmem:[%s1235_s3 + $0x108] sm:$0xff] }
 0x178   : > { %604 = vperm.xlu1 %1027, %v426_v42   ;;  %v432_v42 = vld [vmem:[%s1235_s3 + $0x110] sm:$0xff] }
 0x179   : > { %v490_v43 = vpop.permute.xlu2 %489 }
 0x17a   : > { %v787_v48 = vmul.f32 %v490_v43, %v1249_v13  ;;  %v465_v51 = vpop.permute.xlu1 %464  ;;  %v1376_v43 = vpop.trf.xlu0 }
 0x17b   : > { %v782_v55 = vmul.f32 %v465_v51, %v1209_v62  ;;  %v429_v62 = vld [vmem:[%s1235_s3 + $0xf8] sm:$0xff] }
 0x17c   : > { %852 = vst.msk [vmem:[%s1341_s6 + $0x28] sm:$0xff] %vm846_vm0, %v787_v48 }
 0x17d   : > { %847 = vst.msk [vmem:[%s1341_s6] sm:$0xff] %vm846_vm0, %v782_v55  ;;  %v433_v55 = vld [vmem:[%s1235_s3 + $0x118] sm:$0xff] }
 0x17f   : > { %609 = vperm.xlu2 %1028, %v427_v1   ;;  %v434_v1 = vld [vmem:[%s1235_s3 + $0x120] sm:$0xff] }
 0x180   : > { %614 = vperm.xlu1 %1027, %v428_v58  }
 0x181   : > { %v500_v52 = vpop.permute.xlu2 %499 }
 0x182   : > { %v789_v14 = vmul.f32 %v500_v52, %v1263_v22  ;;  %v480_v13 = vpop.permute.xlu1 %479  ;;  %v1386_v58 = vpop.trf.xlu0 }
 0x183   : > { %v785_v15 = vmul.f32 %v480_v13, %v1228_v5  ;;  %v400_v13 = vld [vmem:[%s1235_s3 + $0x10] sm:$0xff] }
 0x184   : > { %854 = vst.msk [vmem:[%s1341_s6 + $0x38] sm:$0xff] %vm846_vm0, %v789_v14 }
 0x185   : > { %850 = vst.msk [vmem:[%s1341_s6 + $0x18] sm:$0xff] %vm846_vm0, %v785_v15  ;;  %v435_v15 = vld [vmem:[%s1235_s3 + $0x128] sm:$0xff] }
 0x187   : > { %619 = vperm.xlu2 %1028, %v429_v62   ;;  %v436_v62 = vld [vmem:[%s1235_s3 + $0x130] sm:$0xff] }
 0x188   : > { %624 = vperm.xlu1 %1027, %v430_v29  }
 0x189   : > { %v510_v34 = vpop.permute.xlu2 %509 }
 0x18a   : > { %v791_v22 = vmul.f32 %v510_v34, %v1277_v31  ;;  %v485_v37 = vpop.permute.xlu1 %484 }
 0x18b   : > { %v786_v5 = vmul.f32 %v485_v37, %v1242_v9 }
 0x18c   : > { %856 = vst.msk [vmem:[%s1341_s6 + $0x48] sm:$0xff] %vm846_vm0, %v791_v22 }
 0x18d   : > { %851 = vst.msk [vmem:[%s1341_s6 + $0x20] sm:$0xff] %vm846_vm0, %v786_v5  ;;  %v438_v5 = vld [vmem:[%s1235_s3 + $0x140] sm:$0xff] }
 0x18f   : > { %629 = vperm.xlu2 %1028, %v431_v38   ;;  %v439_v38 = vld [vmem:[%s1235_s3 + $0x148] sm:$0xff] }
 0x190   : > { %634 = vperm.xlu1 %1027, %v432_v42  }
 0x191   : > { %v520_v48 = vpop.permute.xlu2 %519 }
 0x192   : > { %v793_v31 = vmul.f32 %v520_v48, %v1293_v41  ;;  %v495_v51 = vpop.permute.xlu1 %494 }
 0x193   : > { %v788_v9 = vmul.f32 %v495_v51, %v1257_v18 }
 0x194   : > { %858 = vst.msk [vmem:[%s1341_s6 + $0x58] sm:$0xff] %vm846_vm0, %v793_v31  ;;  %v440_v31 = vld [vmem:[%s1235_s3 + $0x150] sm:$0xff] }
 0x195   : > { %853 = vst.msk [vmem:[%s1341_s6 + $0x30] sm:$0xff] %vm846_vm0, %v788_v9  ;;  %v441_v9 = vld [vmem:[%s1235_s3 + $0x158] sm:$0xff] }
 0x197   : > { %639 = vperm.xlu2 %1028, %v433_v55   ;;  %v442_v55 = vld [vmem:[%s1235_s3 + $0x160] sm:$0xff] }
 0x198   : > { %644 = vperm.xlu1 %1027, %v434_v1  }
 0x199   : > { %v530_v52 = vpop.permute.xlu2 %529 }
 0x19a   : > { %v795_v41 = vmul.f32 %v530_v52, %v1311_v53  ;;  %v505_v14 = vpop.permute.xlu1 %504  ;;  %v1397_v53 = vpop.trf.xlu0 }
 0x19b   : > { %v790_v18 = vmul.f32 %v505_v14, %v1269_v26  ;;  %v437_v26 = vld [vmem:[%s1235_s3 + $0x138] sm:$0xff]  ;;  %v444_v14 = vld [vmem:[%s1235_s3 + $0x170] sm:$0xff] }
 0x19c   : > { %860 = vst.msk [vmem:[%s1341_s6 + $0x68] sm:$0xff] %vm846_vm0, %v795_v41 }
 0x19d   : > { %855 = vst.msk [vmem:[%s1341_s6 + $0x40] sm:$0xff] %vm846_vm0, %v790_v18  ;;  %474 = vperm.xlu0 %1029, %v400_v13   ;;  %v445_v13 = vld [vmem:[%s1235_s3 + $0x178] sm:$0xff] }
 0x19f   : > { %649 = vperm.xlu2 %1028, %v435_v15  }
 0x1a0   : > { %654 = vperm.xlu1 %1027, %v436_v62  }
 0x1a1   : > { %v540_v29 = vpop.permute.xlu2 %539 }
 0x1a2   : > { %v797_v34 = vmul.f32 %v540_v29, %v1324_v19  ;;  %v515_v22 = vpop.permute.xlu1 %514  ;;  %v1411_v51 = vpop.trf.xlu0 }
 0x1a3   : > { %v792_v37 = vmul.f32 %v515_v22, %v1285_v36  ;;  %v448_v22 = vld [vmem:[%s1235_s3 + $0x190] sm:$0xff] }
 0x1a4   : > { %862 = vst.msk [vmem:[%s1341_s6 + $0x78] sm:$0xff] %vm846_vm0, %v797_v34  ;;  %v447_v34 = vld [vmem:[%s1235_s3 + $0x188] sm:$0xff] }
 0x1a5   : > { %857 = vst.msk [vmem:[%s1341_s6 + $0x50] sm:$0xff] %vm846_vm0, %v792_v37  ;;  %659 = vperm.xlu0 %1029, %v437_v26  }
 0x1a7   : > { %664 = vperm.xlu2 %1028, %v438_v5  }
 0x1a8   : > { %669 = vperm.xlu1 %1027, %v439_v38  }
 0x1a9   : > { %v550_v42 = vpop.permute.xlu2 %549 }
 0x1aa   : > { %v799_v19 = vmul.f32 %v550_v42, %v1205_v60  ;;  %v525_v48 = vpop.permute.xlu1 %524  ;;  %v1428_v18 = vpop.trf.xlu0  ;;  %v450_v42 = vld [vmem:[%s1235_s3 + $0x1a0] sm:$0xff] }
 0x1ab   : > { %v794_v36 = vmul.f32 %v525_v48, %v1301_v46  ;;  %v443_v46 = vld [vmem:[%s1235_s3 + $0x168] sm:$0xff] }
 0x1ac   : > { %864 = vst.msk [vmem:[%s1341_s6 + $0x88] sm:$0xff] %vm846_vm0, %v799_v19  ;;  %v451_v19 = vld [vmem:[%s1235_s3 + $0x1a8] sm:$0xff] }
 0x1ad   : > { %859 = vst.msk [vmem:[%s1341_s6 + $0x60] sm:$0xff] %vm846_vm0, %v794_v36  ;;  %674 = vperm.xlu0 %1029, %v440_v31  }
 0x1af   : > { %679 = vperm.xlu2 %1028, %v441_v9  }
 0x1b0   : > { %684 = vperm.xlu1 %1027, %v442_v55   ;;  %v453_v55 = vld [vmem:[%s1235_s3 + $0x1b8] sm:$0xff] }
 0x1b1   : > { %v560_v60 = vpop.permute.xlu2 %559 }
 0x1b2   : > { %v801_v1 = vmul.f32 %v560_v60, %v1219_v2  ;;  %v535_v52 = vpop.permute.xlu1 %534  ;;  %v1439_v26 = vpop.trf.xlu0  ;;  %v454_v60 = vld [vmem:[%s1235_s3 + $0x1c0] sm:$0xff] }
 0x1b3   : > { %v796_v41 = vmul.f32 %v535_v52, %v1320_v11  ;;  %v446_v11 = vld [vmem:[%s1235_s3 + $0x180] sm:$0xff] }
 0x1b4   : > { %866 = vst.msk [vmem:[%s1341_s6 + $0x98] sm:$0xff] %vm846_vm0, %v801_v1 }
 0x1b5   : > { %861 = vst.msk [vmem:[%s1341_s6 + $0x70] sm:$0xff] %vm846_vm0, %v796_v41  ;;  %689 = vperm.xlu0 %1029, %v443_v46   ;;  %v455_v46 = vld [vmem:[%s1235_s3 + $0x1c8] sm:$0xff] }
 0x1b7   : > { %694 = vperm.xlu2 %1028, %v444_v14   ;;  %v456_v14 = vld [vmem:[%s1235_s3 + $0x1d0] sm:$0xff] }
 0x1b8   : > { %699 = vperm.xlu1 %1027, %v445_v13   ;;  %v457_v13 = vld [vmem:[%s1235_s3 + $0x1d8] sm:$0xff] }
 0x1b9   : > { %v570_v2 = vpop.permute.xlu2 %569 }
 0x1ba   : > { %v803_v15 = vmul.f32 %v570_v2, %v1244_v10  ;;  %v545_v62 = vpop.permute.xlu1 %544 }
 0x1bb   : > { %v798_v29 = vmul.f32 %v545_v62, %v1199_v56  ;;  %v449_v56 = vld [vmem:[%s1235_s3 + $0x198] sm:$0xff] }
 0x1bc   : > { %868 = vst.msk [vmem:[%s1341_s6 + $0xa8] sm:$0xff] %vm846_vm0, %v803_v15 }
 0x1bd   : > { %863 = vst.msk [vmem:[%s1341_s6 + $0x80] sm:$0xff] %vm846_vm0, %v798_v29  ;;  %704 = vperm.xlu0 %1029, %v446_v11   ;;  %v459_v11 = vld [vmem:[%s1235_s3 + $0x1e8] sm:$0xff]  ;;  %v460_v29 = vld [vmem:[%s1235_s3 + $0x1f0] sm:$0xff] }
 0x1bf   : > { %709 = vperm.xlu2 %1028, %v447_v34  }
 0x1c0   : > { %714 = vperm.xlu1 %1027, %v448_v22  }
 0x1c1   : > { %v580_v10 = vpop.permute.xlu2 %579 }
 0x1c2   : > { %v805_v37 = vmul.f32 %v580_v10, %v1261_v21  ;;  %v555_v5 = vpop.permute.xlu1 %554  ;;  %v1450_v21 = vpop.trf.xlu0 }
 0x1c3   : > { %v800_v38 = vmul.f32 %v555_v5, %v1211_v63  ;;  %v452_v63 = vld [vmem:[%s1235_s3 + $0x1b0] sm:$0xff] }
 0x1c4   : > { %870 = vst.msk [vmem:[%s1341_s6 + $0xb8] sm:$0xff] %vm846_vm0, %v805_v37  ;;  %v461_v37 = vld [vmem:[%s1235_s3 + $0x1f8] sm:$0xff] }
 0x1c5   : > { %865 = vst.msk [vmem:[%s1341_s6 + $0x90] sm:$0xff] %vm846_vm0, %v800_v38  ;;  %719 = vperm.xlu0 %1029, %v449_v56  }
 0x1c7   : > { %724 = vperm.xlu2 %1028, %v450_v42  }
 0x1c8   : > { %729 = vperm.xlu1 %1027, %v451_v19  }
 0x1c9   : > { %v590_v48 = vpop.permute.xlu2 %589 }
 0x1ca   : > { %v807_v31 = vmul.f32 %v590_v48, %v1280_v33  ;;  %v565_v36 = vpop.permute.xlu1 %564  ;;  %v1464_v41 = vpop.trf.xlu0 }
 0x1cb   : > { %v802_v9 = vmul.f32 %v565_v36, %v1237_v6 }
 0x1cc   : > { %872 = vst.msk [vmem:[%s1341_s6 + $0xc8] sm:$0xff] %vm846_vm0, %v807_v31 }
 0x1cd   : > { %867 = vst.msk [vmem:[%s1341_s6 + $0xa0] sm:$0xff] %vm846_vm0, %v802_v9  ;;  %734 = vperm.xlu0 %1029, %v452_v63  }
 0x1cf   : > { %739 = vperm.xlu2 %1028, %v453_v55  }
 0x1d0   : > { %744 = vperm.xlu1 %1027, %v454_v60  }
 0x1d1   : > { %v600_v1 = vpop.permute.xlu2 %599 }
 0x1d2   : > { %v809_v33 = vmul.f32 %v600_v1, %v1297_v44  ;;  %v575_v52 = vpop.permute.xlu1 %574  ;;  %v1481_v34 = vpop.trf.xlu0 }
 0x1d3   : > { %v804_v6 = vmul.f32 %v575_v52, %v1253_v16  ;;  %v458_v16 = vld [vmem:[%s1235_s3 + $0x1e0] sm:$0xff] }
 0x1d4   : > { %874 = vst.msk [vmem:[%s1341_s6 + $0xd8] sm:$0xff] %vm846_vm0, %v809_v33 }
 0x1d5   : > { %869 = vst.msk [vmem:[%s1341_s6 + $0xb0] sm:$0xff] %vm846_vm0, %v804_v6  ;;  %749 = vperm.xlu0 %1029, %v455_v46  }
 0x1d7   : > { %754 = vperm.xlu2 %1028, %v456_v14  }
 0x1d8   : > { %759 = vperm.xlu1 %1027, %v457_v13  }
 0x1d9   : > { %v610_v44 = vpop.permute.xlu2 %609 }
 0x1da   : > { %v811_v2 = vmul.f32 %v610_v44, %v1315_v59  ;;  %v585_v15 = vpop.permute.xlu1 %584  ;;  %v1490_v5 = vpop.trf.xlu0 }
 0x1db   : > { %v806_v62 = vmul.f32 %v585_v15, %v1271_v27 }
 0x1dc   : > { %876 = vst.msk [vmem:[%s1341_s6 + $0xe8] sm:$0xff] %vm846_vm0, %v811_v2 }
 0x1dd   : > { %871 = vst.msk [vmem:[%s1341_s6 + $0xc0] sm:$0xff] %vm846_vm0, %v806_v62  ;;  %764 = vperm.xlu0 %1029, %v458_v16  }
 0x1df   : > { %769 = vperm.xlu2 %1028, %v459_v11  }
 0x1e0   : > { %774 = vperm.xlu1 %1027, %v460_v29  }
 0x1e1   : > { %v620_v59 = vpop.permute.xlu2 %619 }
 0x1e2   : > { %v813_v22 = vmul.f32 %v620_v59, %v1334_v32  ;;  %v595_v10 = vpop.permute.xlu1 %594  ;;  %v1498_v19 = vpop.trf.xlu0 }
 0x1e3   : > { %v808_v27 = vmul.f32 %v595_v10, %v1289_v39 }
 0x1e4   : > { %878 = vst.msk [vmem:[%s1341_s6 + $0xf8] sm:$0xff] %vm846_vm0, %v813_v22 }
 0x1e5   : > { %873 = vst.msk [vmem:[%s1341_s6 + $0xd0] sm:$0xff] %vm846_vm0, %v808_v27  ;;  %779 = vperm.xlu0 %1029, %v461_v37  }
 0x1e9   : > { %v630_v56 = vpop.permute.xlu2 %629 }
 0x1ea   : > { %v815_v38 = vmul.f32 %v630_v56, %v1201_v57  ;;  %v605_v42 = vpop.permute.xlu1 %604  ;;  %v1508_v55 = vpop.trf.xlu0 }
 0x1eb   : > { %v810_v32 = vmul.f32 %v605_v42, %v1306_v49 }
 0x1ec   : > { %880 = vst.msk [vmem:[%s1341_s6 + $0x108] sm:$0xff] %vm846_vm0, %v815_v38 }
 0x1ed   : > { %875 = vst.msk [vmem:[%s1341_s6 + $0xe0] sm:$0xff] %vm846_vm0, %v810_v32 }
 0x1f1   : > { %v640_v39 = vpop.permute.xlu2 %639 }
 0x1f2   : > { %v817_v48 = vmul.f32 %v640_v39, %v1213_v0  ;;  %v615_v31 = vpop.permute.xlu1 %614 }
 0x1f3   : > { %v812_v36 = vmul.f32 %v615_v31, %v1326_v20 }
 0x1f4   : > { %882 = vst.msk [vmem:[%s1341_s6 + $0x118] sm:$0xff] %vm846_vm0, %v817_v48 }
 0x1f5   : > { %877 = vst.msk [vmem:[%s1341_s6 + $0xf0] sm:$0xff] %vm846_vm0, %v812_v36 }
 0x1f9   : > { %v650_v57 = vpop.permute.xlu2 %649 }
 0x1fa   : > { %v819_v49 = vmul.f32 %v650_v57, %v1239_v7  ;;  %v625_v63 = vpop.permute.xlu1 %624 }
 0x1fb   : > { %v814_v9 = vmul.f32 %v625_v63, %v1196_v54  ;;  %v1520_v54 = vpop.trf.xlu0 }
 0x1fc   : > { %884 = vst.msk [vmem:[%s1341_s6 + $0x128] sm:$0xff] %vm846_vm0, %v819_v49 }
 0x1fd   : > { %879 = vst.msk [vmem:[%s1341_s6 + $0x100] sm:$0xff] %vm846_vm0, %v814_v9 }
 0x201   : > { %v665_v0 = vpop.permute.xlu2 %664 }
 0x202   : > { %v822_v20 = vmul.f32 %v665_v0, %v1265_v23  ;;  %v635_v60 = vpop.permute.xlu1 %634 }
 0x203   : > { %v816_v1 = vmul.f32 %v635_v60, %v1207_v61 }
 0x204   : > { %887 = vst.msk [vmem:[%s1341_s6 + $0x140] sm:$0xff] %vm846_vm0, %v822_v20 }
 0x205   : > { %881 = vst.msk [vmem:[%s1341_s6 + $0x110] sm:$0xff] %vm846_vm0, %v816_v1 }
 0x209   : > { %v680_v7 = vpop.permute.xlu2 %679 }
 0x20a   : > { %v825_v33 = vmul.f32 %v680_v7, %v1291_v40  ;;  %v645_v52 = vpop.permute.xlu1 %644 }
 0x20b   : > { %v818_v46 = vmul.f32 %v645_v52, %v1223_v4 }
 0x20c   : > { %890 = vst.msk [vmem:[%s1341_s6 + $0x158] sm:$0xff] %vm846_vm0, %v825_v33 }
 0x20d   : > { %883 = vst.msk [vmem:[%s1341_s6 + $0x120] sm:$0xff] %vm846_vm0, %v818_v46 }
 0x20f   : > { %v475_v61 = vpop.permute.xlu0 %474 }
 0x210   : > { %v784_v23 = vmul.f32 %v475_v61, %v1221_v3 }
 0x211   : > { %v695_v6 = vpop.permute.xlu2 %694 }
 0x212   : > { %849 = vst.msk [vmem:[%s1341_s6 + $0x10] sm:$0xff] %vm846_vm0, %v784_v23  ;;  %v828_v14 = vmul.f32 %v695_v6, %v1318_v8  ;;  %v655_v13 = vpop.permute.xlu1 %654 }
 0x213   : > { %v820_v40 = vmul.f32 %v655_v13, %v1247_v12 }
 0x214   : > { %893 = vst.msk [vmem:[%s1341_s6 + $0x170] sm:$0xff] %vm846_vm0, %v828_v14 }
 0x215   : > { %885 = vst.msk [vmem:[%s1341_s6 + $0x130] sm:$0xff] %vm846_vm0, %v820_v40 }
 0x217   : > { %v660_v4 = vpop.permute.xlu0 %659 }
 0x218   : > { %v821_v44 = vmul.f32 %v660_v4, %v1255_v17 }
 0x219   : > { %v710_v3 = vpop.permute.xlu2 %709 }
 0x21a   : > { %886 = vst.msk [vmem:[%s1341_s6 + $0x138] sm:$0xff] %vm846_vm0, %v821_v44  ;;  %v831_v2 = vmul.f32 %v710_v3, %v1348_v47  ;;  %v670_v15 = vpop.permute.xlu1 %669 }
 0x21b   : > { %v823_v8 = vmul.f32 %v670_v15, %v1273_v28 }
 0x21c   : > { %896 = vst.msk [vmem:[%s1341_s6 + $0x188] sm:$0xff] %vm846_vm0, %v831_v2 }
 0x21d   : > { %888 = vst.msk [vmem:[%s1341_s6 + $0x148] sm:$0xff] %vm846_vm0, %v823_v8 }
 0x21f   : > { %v675_v12 = vpop.permute.xlu0 %674 }
 0x220   : > { %v824_v16 = vmul.f32 %v675_v12, %v1283_v35 }
 0x221   : > { %v725_v17 = vpop.permute.xlu2 %724 }
 0x222   : > { %889 = vst.msk [vmem:[%s1341_s6 + $0x150] sm:$0xff] %vm846_vm0, %v824_v16  ;;  %v834_v62 = vmul.f32 %v725_v17, %v1386_v58  ;;  %v685_v11 = vpop.permute.xlu1 %684 }
 0x223   : > { %v826_v47 = vmul.f32 %v685_v11, %v1299_v45 }
 0x224   : > { %899 = vst.msk [vmem:[%s1341_s6 + $0x1a0] sm:$0xff] %vm846_vm0, %v834_v62 }
 0x225   : > { %891 = vst.msk [vmem:[%s1341_s6 + $0x160] sm:$0xff] %vm846_vm0, %v826_v47 }
 0x227   : > { %v690_v28 = vpop.permute.xlu0 %689 }
 0x228   : > { %v827_v29 = vmul.f32 %v690_v28, %v1308_v50 }
 0x229   : > { %v740_v35 = vpop.permute.xlu2 %739 }
 0x22a   : > { %892 = vst.msk [vmem:[%s1341_s6 + $0x168] sm:$0xff] %vm846_vm0, %v827_v29  ;;  %v837_v59 = vmul.f32 %v740_v35, %v1428_v18  ;;  %v700_v22 = vpop.permute.xlu1 %699 }
 0x22b   : > { %v829_v58 = vmul.f32 %v700_v22, %v1328_v24 }
 0x22c   : > { %902 = vst.msk [vmem:[%s1341_s6 + $0x1b8] sm:$0xff] %vm846_vm0, %v837_v59 }
 0x22d   : > { %894 = vst.msk [vmem:[%s1341_s6 + $0x178] sm:$0xff] %vm846_vm0, %v829_v58 }
 0x22f   : > { %v705_v45 = vpop.permute.xlu0 %704 }
 0x230   : > { %v830_v10 = vmul.f32 %v705_v45, %v1332_v30 }
 0x231   : > { %v755_v50 = vpop.permute.xlu2 %754 }
 0x232   : > { %895 = vst.msk [vmem:[%s1341_s6 + $0x180] sm:$0xff] %vm846_vm0, %v830_v10  ;;  %v840_v37 = vmul.f32 %v755_v50, %v1464_v41  ;;  %v715_v18 = vpop.permute.xlu1 %714 }
 0x233   : > { %v832_v27 = vmul.f32 %v715_v18, %v1360_v25 }
 0x234   : > { %905 = vst.msk [vmem:[%s1341_s6 + $0x1d0] sm:$0xff] %vm846_vm0, %v840_v37 }
 0x235   : > { %897 = vst.msk [vmem:[%s1341_s6 + $0x190] sm:$0xff] %vm846_vm0, %v832_v27 }
 0x237   : > { %v720_v24 = vpop.permute.xlu0 %719 }
 0x238   : > { %v833_v56 = vmul.f32 %v720_v24, %v1376_v43 }
 0x239   : > { %v770_v30 = vpop.permute.xlu2 %769 }
 0x23a   : > { %898 = vst.msk [vmem:[%s1341_s6 + $0x198] sm:$0xff] %vm846_vm0, %v833_v56  ;;  %v843_v38 = vmul.f32 %v770_v30, %v1498_v19  ;;  %v730_v41 = vpop.permute.xlu1 %729 }
 0x23b   : > { %v835_v42 = vmul.f32 %v730_v41, %v1397_v53 }
 0x23c   : > { %908 = vst.msk [vmem:[%s1341_s6 + $0x1e8] sm:$0xff] %vm846_vm0, %v843_v38 }
 0x23d   : > { %900 = vst.msk [vmem:[%s1341_s6 + $0x1a8] sm:$0xff] %vm846_vm0, %v835_v42 }
 0x23f   : > { %v735_v25 = vpop.permute.xlu0 %734 }
 0x240   : > { %v836_v32 = vmul.f32 %v735_v25, %v1411_v51 }
 0x242   : > { %901 = vst.msk [vmem:[%s1341_s6 + $0x1b0] sm:$0xff] %vm846_vm0, %v836_v32  ;;  %v745_v43 = vpop.permute.xlu1 %744 }
 0x243   : > { %v838_v39 = vmul.f32 %v745_v43, %v1439_v26 }
 0x245   : > { %903 = vst.msk [vmem:[%s1341_s6 + $0x1c0] sm:$0xff] %vm846_vm0, %v838_v39 }
 0x247   : > { %v750_v19 = vpop.permute.xlu0 %749 }
 0x248   : > { %v839_v53 = vmul.f32 %v750_v19, %v1450_v21 }
 0x24a   : > { %904 = vst.msk [vmem:[%s1341_s6 + $0x1c8] sm:$0xff] %vm846_vm0, %v839_v53  ;;  %v760_v48 = vpop.permute.xlu1 %759 }
 0x24b   : > { %v841_v31 = vmul.f32 %v760_v48, %v1481_v34 }
 0x24d   : > { %906 = vst.msk [vmem:[%s1341_s6 + $0x1d8] sm:$0xff] %vm846_vm0, %v841_v31 }
 0x24f   : > { %v765_v51 = vpop.permute.xlu0 %764 }
 0x250   : > { %v842_v36 = vmul.f32 %v765_v51, %v1490_v5 }
 0x252   : > { %907 = vst.msk [vmem:[%s1341_s6 + $0x1e0] sm:$0xff] %vm846_vm0, %v842_v36  ;;  %v775_v57 = vpop.permute.xlu1 %774 }
 0x253   : > { %v844_v26 = vmul.f32 %v775_v57, %v1508_v55 }
 0x255   : > { %909 = vst.msk [vmem:[%s1341_s6 + $0x1f0] sm:$0xff] %vm846_vm0, %v844_v26 }
 0x257   : > { %v780_v49 = vpop.permute.xlu0 %779 }
 0x258   : > { %v845_v21 = vmul.f32 %v780_v49, %v1520_v54 }
 0x25a   : > { %910 = vst.msk [vmem:[%s1341_s6 + $0x1f8] sm:$0xff] %vm846_vm0, %v845_v21 }
 0x25b PF: > { %p9_p9 = scmp.ge.s32.totalorder %s1087_s13, 5   ;;  %s1616_s9 = smov %s1048_s10 }
 0x25c   : > { %s1617_s10 = smov %s1096_s16  ;;  %s1618_s11 = smov %s1087_s13 }
 0x25d   :  { %11 = sbr.rel (!%p9_p9) target bundleno = 2 (0x2), region = 89 }

</bundles_post_ra>
